<compile_context>
chip_gen: v7x
topology: tpu7x:2x2x1
jax: 0.10.0
libtpu: 0.0.40
codegen_flags: <defaults>
</compile_context>

<pallas_src>
import jax
import jax.numpy as jnp
from jax.experimental import pallas as pl
from jax.experimental.pallas import tpu as pltpu

NEG_SLOPE = 0.2
BN_EPS = 1e-5
SUBLANE = 8
TILE_N_MAX = 1024


def _leaky_relu(x, slope):
    return jnp.where(x >= 0, x, slope * x)


def _round_up(n, m):
    return ((n + m - 1) // m) * m


def _pick_tile_n(n):
    """Row tile: <= TILE_N_MAX, sublane-aligned, and >= 2 grid steps once
    n > 128 so the 'parallel' grid axis can be sharded across both v7x TCs."""
    if n <= 128:
        return _round_up(n, SUBLANE)
    half = _round_up(pl.cdiv(n, 2), 128)
    return int(min(TILE_N_MAX, half))


def _vmem_capacity_bytes():
    try:
        return int(pltpu.get_tpu_info().vmem_capacity_bytes)
    except Exception:  # non-TPU backend / API drift: assume the smallest (v7x)
        return 64 << 20


def mlp_kernel(x_ref, s1_ref, t1_ref, w1_ref, b1_ref, w2_ref, b2_ref, o_ref):
    # BN1 (eval) pre-folded to per-feature scale/shift, then LeakyReLU.
    h = x_ref[...] * s1_ref[...] + t1_ref[...]
    h = _leaky_relu(h, NEG_SLOPE)
    # Dropout(p=0.0) == identity in eval mode.
    # TODO(synk): training-mode dropout (p>0) would need pltpu.prng_* masking.

    # Linear(in->mid) with BN2 pre-folded into W1'/b1', then LeakyReLU.
    w1 = w1_ref[...]
    h = jnp.dot(h.astype(w1.dtype), w1,
                preferred_element_type=jnp.float32) + b1_ref[...]
    h = _leaky_relu(h, NEG_SLOPE)

    # Linear(mid->out), fed directly from vregs (no VMEM round-trip).
    w2 = w2_ref[...]
    out = jnp.dot(h.astype(w2.dtype), w2,
                  preferred_element_type=jnp.float32) + b2_ref[...]
    o_ref[...] = out.astype(o_ref.dtype)


def prepare_params(params, *, use_bf16_matmul=True):
    """Fold BN1 into scale/shift, BN2 into Linear1, cast weights. Call once
    at model-load time (hoisted out of the per-forward path)."""
    scale1 = params["bn1_gamma"] * jax.lax.rsqrt(params["bn1_var"] + BN_EPS)
    shift1 = params["bn1_beta"] - params["bn1_mean"] * scale1
    scale2 = params["bn2_gamma"] * jax.lax.rsqrt(params["bn2_var"] + BN_EPS)
    w_dtype = jnp.bfloat16 if use_bf16_matmul else jnp.float32
    return {
        "s1": scale1.astype(jnp.float32),
        "t1": shift1.astype(jnp.float32),
        "w1": (params["w1_t"] * scale2).astype(w_dtype),
        "b1": ((params["b1"] - params["bn2_mean"]) * scale2
               + params["bn2_beta"]).astype(jnp.float32),
        "w2": params["w2_t"].astype(w_dtype),
        "b2": params["b2"].astype(jnp.float32),
    }


def mlp_forward(x, prep):
    """x: (N, in_channels) float32. prep: dict from prepare_params()."""
    N, c_in = x.shape
    c_mid = prep["w1"].shape[1]
    c_out = prep["w2"].shape[1]

    tile_n = _pick_tile_n(N)
    grid = (pl.cdiv(N, tile_n),)

    def row_spec(c):
        return pl.BlockSpec((tile_n, c), lambda i: (i, 0))     # streamed over N

    def pin_spec(r, c):
        return pl.BlockSpec((r, c), lambda i: (0, 0))           # VMEM-resident

    # VMEM budget: double-buffered x/out row tiles + pinned params + live h.
    w_itemsize = jnp.dtype(prep["w1"].dtype).itemsize
    w_bytes = (c_in * c_mid + c_mid * c_out) * w_itemsize
    param_bytes = (2 * c_in + c_mid + c_out) * 4
    stream_bytes = 2 * tile_n * (c_in + c_out) * 4
    live_bytes = tile_n * c_mid * 4
    est = stream_bytes + 2 * (w_bytes + param_bytes) + live_bytes
    vmem_limit = int(min(max(2 * est, 16 << 20), _vmem_capacity_bytes() // 2))

    # TODO(synk): for very large channel counts (weights >> VMEM) add an
    # 'arbitrary' grid axis over c_mid and accumulate into the output block.

    cost = pl.CostEstimate(
        flops=2 * N * c_in * c_mid + 2 * N * c_mid * c_out,
        transcendentals=0,
        bytes_accessed=int(x.size * 4 + w_bytes + N * c_out * 4),
    )

    return pl.pallas_call(
        mlp_kernel,
        out_shape=jax.ShapeDtypeStruct((N, c_out), jnp.float32),
        grid=grid,
        in_specs=[
            row_spec(c_in),                              # x tile
            pin_spec(1, c_in), pin_spec(1, c_in),        # folded BN1 scale/shift
            pin_spec(c_in, c_mid), pin_spec(1, c_mid),   # W1' (BN2-folded), b1'
            pin_spec(c_mid, c_out), pin_spec(1, c_out),  # W2, b2
        ],
        out_specs=row_spec(c_out),
        compiler_params=pltpu.CompilerParams(
            dimension_semantics=("parallel",),
            vmem_limit_bytes=vmem_limit,
        ),
        cost_estimate=cost,
    )(x, prep["s1"], prep["t1"], prep["w1"], prep["b1"], prep["w2"], prep["b2"])


def init_params(key, in_channels, mid_channels, out_channels):
    ks = jax.random.split(key, 8)
    p = {}
    # BatchNorm1d(in_channels): nontrivial deterministic running stats.
    p["bn1_gamma"] = (1.0 + 0.1 * jax.random.normal(ks[0], (1, in_channels))).astype(jnp.float32)
    p["bn1_beta"] = (0.1 * jax.random.normal(ks[1], (1, in_channels))).astype(jnp.float32)
    p["bn1_mean"] = (0.05 * jax.random.normal(ks[2], (1, in_channels))).astype(jnp.float32)
    p["bn1_var"] = (1.0 + 0.1 * jnp.abs(jax.random.normal(ks[3], (1, in_channels)))).astype(jnp.float32)
    # Linear(in -> mid): PyTorch weight is (mid, in); store transposed (in, mid).
    bound1 = 1.0 / jnp.sqrt(in_channels)
    p["w1_t"] = jax.random.uniform(ks[4], (in_channels, mid_channels),
                                   minval=-bound1, maxval=bound1).astype(jnp.float32)
    p["b1"] = jax.random.uniform(ks[5], (1, mid_channels),
                                 minval=-bound1, maxval=bound1).astype(jnp.float32)
    # BatchNorm1d(mid_channels): nontrivial running stats.
    p["bn2_gamma"] = (1.0 + 0.1 * jax.random.normal(ks[0], (1, mid_channels))).astype(jnp.float32)
    p["bn2_beta"] = (0.1 * jax.random.normal(ks[1], (1, mid_channels))).astype(jnp.float32)
    p["bn2_mean"] = (0.05 * jax.random.normal(ks[2], (1, mid_channels))).astype(jnp.float32)
    p["bn2_var"] = (1.0 + 0.1 * jnp.abs(jax.random.normal(ks[3], (1, mid_channels)))).astype(jnp.float32)
    # Linear(mid -> out).
    bound2 = 1.0 / jnp.sqrt(mid_channels)
    p["w2_t"] = jax.random.uniform(ks[6], (mid_channels, out_channels),
                                   minval=-bound2, maxval=bound2).astype(jnp.float32)
    p["b2"] = jax.random.uniform(ks[7], (1, out_channels),
                                 minval=-bound2, maxval=bound2).astype(jnp.float32)
    return p


def mlp_reference(x, p):
    """Pure-JAX reference matching PyTorch eval() forward."""
    h = (x - p["bn1_mean"]) * jax.lax.rsqrt(p["bn1_var"] + BN_EPS) * p["bn1_gamma"] + p["bn1_beta"]
    h = _leaky_relu(h, NEG_SLOPE)
    h = h @ p["w1_t"] + p["b1"]
    h = (h - p["bn2_mean"]) * jax.lax.rsqrt(p["bn2_var"] + BN_EPS) * p["bn2_gamma"] + p["bn2_beta"]
    h = _leaky_relu(h, NEG_SLOPE)
    return h @ p["w2_t"] + p["b2"]


if __name__ == "__main__":
    key = jax.random.PRNGKey(0)
    k_x, k_p, k_x2, k_p2 = jax.random.split(key, 4)

    # Small shapes consistent with the module; f32 weights -> tight tolerance.
    N, c_in, c_mid, c_out = 8, 32, 64, 16
    x = jax.random.normal(k_x, (N, c_in), dtype=jnp.float32)
    params = init_params(k_p, c_in, c_mid, c_out)
    prep_f32 = prepare_params(params, use_bf16_matmul=False)
    out = jax.block_until_ready(mlp_forward(x, prep_f32))
    ref = mlp_reference(x, params)
    assert out.shape == (N, c_out)
    assert jnp.allclose(out, ref, atol=1e-4, rtol=1e-4), "mismatch vs reference (f32)"

    # Larger shape: exercises the multi-step parallel grid, a ragged last
    # row block, non-128 channel dims and the default bf16 MXU path.
    N2, ci2, cm2, co2 = 600, 96, 192, 48
    x2 = jax.random.normal(k_x2, (N2, ci2), dtype=jnp.float32)
    params2 = init_params(k_p2, ci2, cm2, co2)
    prep_bf16 = prepare_params(params2)            # default: bf16 weights
    out2 = jax.block_until_ready(mlp_forward(x2, prep_bf16))
    ref2 = mlp_reference(x2, params2)
    assert out2.shape == (N2, co2)
    rel_err = jnp.max(jnp.abs(out2 - ref2)) / (jnp.max(jnp.abs(ref2)) + 1e-6)
    assert rel_err < 3e-2, f"bf16 path mismatch, rel err {rel_err}"

    print("KERNEL_OK")
</pallas_src>

<mosaic_0001>
module attributes {stable_mosaic.version = 11 : i64} {
  func.func @mlp_kernel(%arg0: i32, %arg1: memref<8x32xf32, #tpu.memory_space<vmem>>, %arg2: memref<1x32xf32, #tpu.memory_space<vmem>>, %arg3: memref<1x32xf32, #tpu.memory_space<vmem>>, %arg4: memref<32x64xf32, #tpu.memory_space<vmem>>, %arg5: memref<1x64xf32, #tpu.memory_space<vmem>>, %arg6: memref<64x16xf32, #tpu.memory_space<vmem>>, %arg7: memref<1x16xf32, #tpu.memory_space<vmem>>, %arg8: memref<8x16xf32, #tpu.memory_space<vmem>>) attributes {dimension_semantics = [#tpu.dimension_semantics<parallel>], iteration_bounds = array<i64: 1>, scalar_prefetch = 0 : i64, scratch_operands = 0 : i64, tpu.core_type = #tpu.core_type<tc>, window_params = [{transform_indices = @transform_0, window_bounds = array<i64: 8, 32>}, {pipeline_mode = #tpu.pipeline_mode<synchronous>, transform_indices = @transform_1, window_bounds = array<i64: 1, 32>}, {pipeline_mode = #tpu.pipeline_mode<synchronous>, transform_indices = @transform_2, window_bounds = array<i64: 1, 32>}, {pipeline_mode = #tpu.pipeline_mode<synchronous>, transform_indices = @transform_3, window_bounds = array<i64: 32, 64>}, {pipeline_mode = #tpu.pipeline_mode<synchronous>, transform_indices = @transform_4, window_bounds = array<i64: 1, 64>}, {pipeline_mode = #tpu.pipeline_mode<synchronous>, transform_indices = @transform_5, window_bounds = array<i64: 64, 16>}, {pipeline_mode = #tpu.pipeline_mode<synchronous>, transform_indices = @transform_6, window_bounds = array<i64: 1, 16>}, {transform_indices = @transform_7, window_bounds = array<i64: 8, 16>}]} {
    %c0 = arith.constant 0 : index
    %c0_0 = arith.constant 0 : index
    %0 = vector.load %arg1[%c0, %c0_0] : memref<8x32xf32, #tpu.memory_space<vmem>>, vector<8x32xf32>
    %c0_1 = arith.constant 0 : index
    %c0_2 = arith.constant 0 : index
    %1 = vector.load %arg2[%c0_1, %c0_2] : memref<1x32xf32, #tpu.memory_space<vmem>>, vector<1x32xf32>
    %2 = vector.broadcast %1 : vector<1x32xf32> to vector<8x32xf32>
    %3 = arith.mulf %0, %2 : vector<8x32xf32>
    %c0_3 = arith.constant 0 : index
    %c0_4 = arith.constant 0 : index
    %4 = vector.load %arg3[%c0_3, %c0_4] : memref<1x32xf32, #tpu.memory_space<vmem>>, vector<1x32xf32>
    %5 = vector.broadcast %4 : vector<1x32xf32> to vector<8x32xf32>
    %6 = arith.addf %3, %5 : vector<8x32xf32>
    %cst = arith.constant 0.000000e+00 : f32
    %7 = vector.broadcast %cst : f32 to vector<8x32xf32>
    %8 = arith.cmpf oge, %6, %7 : vector<8x32xf32>
    %cst_5 = arith.constant 2.000000e-01 : f32
    %9 = vector.broadcast %cst_5 : f32 to vector<8x32xf32>
    %10 = arith.mulf %9, %6 : vector<8x32xf32>
    %11 = arith.select %8, %6, %10 : vector<8x32xi1>, vector<8x32xf32>
    %c0_6 = arith.constant 0 : index
    %c0_7 = arith.constant 0 : index
    %12 = vector.load %arg4[%c0_6, %c0_7] : memref<32x64xf32, #tpu.memory_space<vmem>>, vector<32x64xf32>
    %cst_8 = arith.constant dense<0.000000e+00> : vector<8x64xf32>
    %13 = tpu.matmul %11, %12, %cst_8 {dimension_numbers = #tpu.dot_dimension_numbers<[1], [0], [0], [1], [0, 0, 1, 1], [], []>} : vector<8x32xf32>, vector<32x64xf32>, vector<8x64xf32> -> vector<8x64xf32>
    %c0_9 = arith.constant 0 : index
    %c0_10 = arith.constant 0 : index
    %14 = vector.load %arg5[%c0_9, %c0_10] : memref<1x64xf32, #tpu.memory_space<vmem>>, vector<1x64xf32>
    %15 = vector.broadcast %14 : vector<1x64xf32> to vector<8x64xf32>
    %16 = arith.addf %13, %15 : vector<8x64xf32>
    %cst_11 = arith.constant 0.000000e+00 : f32
    %17 = vector.broadcast %cst_11 : f32 to vector<8x64xf32>
    %18 = arith.cmpf oge, %16, %17 : vector<8x64xf32>
    %cst_12 = arith.constant 2.000000e-01 : f32
    %19 = vector.broadcast %cst_12 : f32 to vector<8x64xf32>
    %20 = arith.mulf %19, %16 : vector<8x64xf32>
    %21 = arith.select %18, %16, %20 : vector<8x64xi1>, vector<8x64xf32>
    %c0_13 = arith.constant 0 : index
    %c0_14 = arith.constant 0 : index
    %22 = vector.load %arg6[%c0_13, %c0_14] : memref<64x16xf32, #tpu.memory_space<vmem>>, vector<64x16xf32>
    %cst_15 = arith.constant dense<0.000000e+00> : vector<8x16xf32>
    %23 = tpu.matmul %21, %22, %cst_15 {dimension_numbers = #tpu.dot_dimension_numbers<[1], [0], [0], [1], [0, 0, 1, 1], [], []>} : vector<8x64xf32>, vector<64x16xf32>, vector<8x16xf32> -> vector<8x16xf32>
    %c0_16 = arith.constant 0 : index
    %c0_17 = arith.constant 0 : index
    %24 = vector.load %arg7[%c0_16, %c0_17] : memref<1x16xf32, #tpu.memory_space<vmem>>, vector<1x16xf32>
    %25 = vector.broadcast %24 : vector<1x16xf32> to vector<8x16xf32>
    %26 = arith.addf %23, %25 : vector<8x16xf32>
    %c0_18 = arith.constant 0 : index
    %c0_19 = arith.constant 0 : index
    %27 = vector.load %arg8[%c0_18, %c0_19] : memref<8x16xf32, #tpu.memory_space<vmem>>, vector<8x16xf32>
    tpu.vector_store %arg8[%c0_18, %c0_19], %26 {strides = array<i32>} : memref<8x16xf32, #tpu.memory_space<vmem>>, vector<8x16xf32>,
    return
  }
  func.func @transform_0(%arg0: i32) -> (i32, i32) {
    %c0_i32 = arith.constant 0 : i32
    %c0_i32_0 = arith.constant 0 : i32
    return %arg0, %c0_i32 : i32, i32
  }
  func.func @transform_1(%arg0: i32) -> (i32, i32) {
    %c0_i32 = arith.constant 0 : i32
    %c0_i32_0 = arith.constant 0 : i32
    %c0_i32_1 = arith.constant 0 : i32
    return %c0_i32, %c0_i32_0 : i32, i32
  }
  func.func @transform_2(%arg0: i32) -> (i32, i32) {
    %c0_i32 = arith.constant 0 : i32
    %c0_i32_0 = arith.constant 0 : i32
    %c0_i32_1 = arith.constant 0 : i32
    return %c0_i32, %c0_i32_0 : i32, i32
  }
  func.func @transform_3(%arg0: i32) -> (i32, i32) {
    %c0_i32 = arith.constant 0 : i32
    %c0_i32_0 = arith.constant 0 : i32
    %c0_i32_1 = arith.constant 0 : i32
    return %c0_i32, %c0_i32_0 : i32, i32
  }
  func.func @transform_4(%arg0: i32) -> (i32, i32) {
    %c0_i32 = arith.constant 0 : i32
    %c0_i32_0 = arith.constant 0 : i32
    %c0_i32_1 = arith.constant 0 : i32
    return %c0_i32, %c0_i32_0 : i32, i32
  }
  func.func @transform_5(%arg0: i32) -> (i32, i32) {
    %c0_i32 = arith.constant 0 : i32
    %c0_i32_0 = arith.constant 0 : i32
    %c0_i32_1 = arith.constant 0 : i32
    return %c0_i32, %c0_i32_0 : i32, i32
  }
  func.func @transform_6(%arg0: i32) -> (i32, i32) {
    %c0_i32 = arith.constant 0 : i32
    %c0_i32_0 = arith.constant 0 : i32
    %c0_i32_1 = arith.constant 0 : i32
    return %c0_i32, %c0_i32_0 : i32, i32
  }
  func.func @transform_7(%arg0: i32) -> (i32, i32) {
    %c0_i32 = arith.constant 0 : i32
    %c0_i32_0 = arith.constant 0 : i32
    return %arg0, %c0_i32 : i32, i32
  }
}

</mosaic_0001>

<bundles_post_ra>
// kernel: tpu_custom_call.1
= control target key start
LH: loop header
LB: loop body
LE: loop exit
PB: predicated region body
PF: predicated region fallthrough
CT: control target
= control target key end

     0   :  { %v336_v3 = vmov 0.0|0.0   ;;  %vm337_vm0 = vmmov 0   ;;  %v338_v6 = vmov 0.0   ;;  %s443_s0 = inlined_call_operand.vmem [shape: f32[8,32], index: 0, kind: input, shape index: {}]   ;;  %s444_s1 = inlined_call_operand.vmem [shape: f32[1,32], index: 1, kind: input, shape index: {}]   ;;  %s445_s2 = inlined_call_operand.vmem [shape: f32[1,32], index: 2, kind: input, shape index: {}]   ;;  %s446_s3 = inlined_call_operand.vmem [shape: f32[32,64], index: 3, kind: input, shape index: {}]   ;;  %s447_s4 = inlined_call_operand.vmem [shape: f32[1,64], index: 4, kind: input, shape index: {}]   ;;  %s448_s5 = inlined_call_operand.vmem [shape: f32[64,16], index: 5, kind: input, shape index: {}]   ;;  %s449_s6 = inlined_call_operand.vmem [shape: f32[1,16], index: 6, kind: input, shape index: {}]   ;;  %s450_s7 = inlined_call_operand.hbm [shape: f32[8,16], index: 7, kind: output, shape index: {}]  }
   0x1   :  { %v47_v0 = vld [vmem:[%s446_s3] sm:$0xff]  ;;  %v48_v1 = vld [vmem:[%s446_s3 + $0x8] sm:$0xff]  ;;  %v49_v2 = vld [vmem:[%s446_s3 + $0x10] sm:$0xff]  ;;  %290 = vmatprep.subr.bf16.mxu0 %v336_v3  ;;  %268 = vmatprep.mubr.msk.f32.mxu0 %vm337_vm0, %v338_v6 }
   0x2   :  { %v291_v4 = vpack.c.bf16 %v48_v1, %v47_v0  ;;  %v50_v5 = vld [vmem:[%s446_s3 + $0x18] sm:$0xff]  ;;  %v27_v7 = vld [vmem:[%s443_s0] sm:$0xff]  ;;  %296 = vmatprep.subr.bf16.mxu1 %v336_v3  ;;  %v136_v12 = vld [vmem:[%s448_s5 + $0x8] sm:$0xff]  ;;  %287 = vmatprep.mubr.msk.f32.mxu1 %vm337_vm0, %v338_v6 }
   0x3   :  { %v240_v8 = vld [vmem:[%s444_s1] ss:$0 sm:$0xff]  ;;  %v294_v13 = vpack.c.bf16 %v50_v5, %v49_v2  ;;  %v137_v15 = vld [vmem:[%s448_s5 + $0x10] sm:$0xff]  ;;  %v138_v16 = vld [vmem:[%s448_s5 + $0x18] sm:$0xff] }
   0x4   :  { %v35_v9 = vmul.f32 %v240_v8, %v27_v7  ;;  %v241_v10 = vld [vmem:[%s445_s2] ss:$0 sm:$0xff]  ;;  %292 = vmatpush3.bf16.msra.mxu0 %v291_v4 }
   0x5   :  { %v135_v11 = vld [vmem:[%s448_s5] sm:$0xff]  ;;  %293 = vmatprep.subr.bf16.mxu0 %v336_v3 }
   0x6   :  { %v297_v14 = vpack.c.bf16 %v136_v12, %v135_v11  ;;  %v43_v17 = vadd.f32 %v241_v10, %v35_v9 }
   0x7   :  { %12 = vsyncpa [#allocation3], 0  ;;  %v300_v18 = vpack.c.bf16 %v138_v16, %v137_v15  ;;  %v139_v20 = vld [vmem:[%s448_s5 + $0x20] sm:$0xff]  ;;  %v140_v21 = vld [vmem:[%s448_s5 + $0x28] sm:$0xff]  ;;  %vm58_vm2 = vcmask 261120   ;;  %vm150_vm4 = vcmask 523264  }
   0x8   :  { %298 = vmatpush3.bf16.msra.mxu1 %v297_v14  ;;  %vm44_vm1 = vcmp.ge.f32.partialorder %v43_v17, 0.0  ;;  %v45_v19 = vmul.f32 0.2, %v43_v17  ;;  %295 = vmatpush3.bf16.msra.mxu0 %v294_v13  ;;  %v303_v23 = vpack.c.bf16 %v140_v21, %v139_v20  ;;  %v141_v24 = vld [vmem:[%s448_s5 + $0x30] sm:$0xff]  ;;  %v142_v25 = vld [vmem:[%s448_s5 + $0x38] sm:$0xff]  ;;  %s339_s8 = smov [#allocation2]  }
   0x9   :  { %299 = vmatprep.subr.bf16.mxu1 %v336_v3  ;;  %v306_v26 = vpack.c.bf16 %v142_v25, %v141_v24  ;;  %v242_v27 = vld [vmem:[%s447_s4] ss:$0 sm:$0xff]  ;;  %s232_s5 = sshll.u32 %s339_s8, 4  ;;  %vm224_vm5 = vcmask 130048   ;;  %s233_s5 = int_to_ptr.vmem [resolvable:$true] %s232_s5 }
   0xa   :  { %v46_v22 = vsel %vm44_vm1, %v43_v17, %v45_v19  ;;  %v244_v33 = vld [vmem:[%s449_s6] ss:$0 sm:$0xff]  ;;  %s312_s4 = scalar_lea.vmem %s233_s5, 128  ;;  %p317_p1 = scmp.lt.s32.totalorder %s233_s5, %s233_s5 }
   0xb   :  { %269 = vmatmul.mubr.msk.f32.vlgmr.msra.gmra.mrb[0].mxu0 %vm58_vm2, %v46_v22  ;;  %p313_p0 = scmp.ne.s32.totalorder %s233_s5, %s312_s4  ;;  %p318_p2 = scmp.lt.s32.totalorder %s312_s4, %s312_s4 }
   0xc   :  { %301 = vmatpush3.bf16.msra.mxu1 %v300_v18 }
   0xd   :  { %302 = vmatprep.subr.bf16.mxu1 %v336_v3  ;;  %p319_p3 = por %p318_p2, %p317_p1 }
   0xf   :  { %p320_p4 = pnand %p319_p3, %p313_p0 }
  0x10   :  { %304 = vmatpush3.bf16.msra.mxu1 %v303_v23 }
  0x11   :  { %305 = vmatprep.subr.bf16.mxu1 %v336_v3 }
  0x14   :  { %307 = vmatpush3.bf16.msra.mxu1 %v306_v26 }
  0xde   :  { %v128_v28 = vpop.f32.mrb[0].mxu0 }
  0xdf   :  { %v129_v29 = vadd.f32 %v242_v27, %v128_v28  ;;  %v270_v30 = vpop.f32.mrb[1].mxu0 }
  0xe1   :  { %vm132_vm3 = vcmp.ge.f32.partialorder %v129_v29, 0.0  ;;  %v133_v31 = vmul.f32 0.2, %v129_v29 }
  0xe3   :  { %v134_v32 = vsel %vm132_vm3, %v129_v29, %v133_v31 }
  0xe4   :  { %288 = vmatmul.mubr.msk.f32.vlgmr.msra.gmra.mrb[0].mxu1 %vm150_vm4, %v134_v32 }
 0x1b7   :  { %v220_v34 = vpop.f32.mrb[0].mxu1 }
 0x1b8   :  { %v221_v35 = vadd.f32 %v244_v33, %v220_v34  ;;  %v289_v36 = vpop.f32.mrb[1].mxu1 }
 0x1ba   :  { %225 = vst.msk [vmem:[#allocation2] sm:$0xff] %vm224_vm5, %v221_v35 }
 0x1bb   :  { %323 = shalt.err (!%p320_p4)
}
 0x1bc   :  { %s324_s11 = scalar_lea.hbm %s450_s7, 128 }
 0x1bd   :  { %p325_p5 = scmp.ne.s32.totalorder %s450_s7, %s324_s11  ;;  %p328_p6 = scmp.lt.u32.totalorder %s324_s11, %s450_s7 }
 0x1bf   :  { %p330_p7 = pnand %p328_p6, %p325_p5 }
 0x1c1   :  { %333 = shalt.err (!%p330_p7)
}
 0x1c2   :  { %235 = dma.vmem_to_hbm [thread:$0]  %s233_s5, 128, %s450_s7, [#allocation3]  }
 0x1c3   :  { %334 = dma.done.wait [#allocation3], 128  }
 0x1c4   :  { %335 = vsyncadd [#allocation3], 4294967168 }
 0x1c5   :  { %239 = vsyncpa [#allocation3], 1 }

</bundles_post_ra>
